<compile_context>
chip_gen: v7x
topology: tpu7x:2x2x1
jax: 0.10.0
libtpu: 0.0.40
codegen_flags: <defaults>
</compile_context>

<pallas_src>
import jax
import jax.numpy as jnp
import numpy as np
from jax.experimental import pallas as pl
from jax.experimental.pallas import tpu as pltpu

DIM = 128   # feature dim (lane axis, multiple of 128)
B = 16      # batch (sublane axis, multiple of 8)


def cac2_kernel(p_ref, v_ref, e_ref, v_out_ref, e_out_ref):
    # p rows: [w_vv1, w_ev1, w_ve1, b_v1, b_e1, w_vv2, w_ev2, w_ve2, b_v2, b_e2]
    p = p_ref[...]        # (10, DIM) f32
    v = v_ref[...]        # (B, DIM)  f32
    e = e_ref[...]        # (B, DIM)  f32

    # In-kernel weight combines (4 vector adds on idle VALU slots, not on the
    # critical chain):  C@w_vv + C@w_ev == C@(w_vv + w_ev).
    wa1 = p[0:1] + p[1:2]     # unit 1: w_vv + w_ev   (drives v update)
    wb1 = p[0:1] + p[2:3]     # unit 1: w_vv + w_ve   (drives e update)
    bv1, be1 = p[3:4], p[4:5]
    wa2 = p[5:6] + p[6:7]     # unit 2: w_vv + w_ev
    wb2 = p[5:6] + p[7:8]     # unit 2: w_vv + w_ve
    bv2, be2 = p[8:9], p[9:10]

    def unit(v, e, wa, wb, bv, be):
        # Rank-1 collapse: C @ w == e * (v . w).  XLU lane reduce + VPU FMAs;
        # no MXU, no (B, dim, dim) tensor.
        s_v = jnp.sum(v * wa, axis=-1, keepdims=True)    # (B, 1)
        s_e = jnp.sum(v * wb, axis=-1, keepdims=True)    # (B, 1)
        v_new = e * s_v + bv                              # (B, DIM)
        e_new = e * s_e + be                              # (B, DIM)
        return v_new, e_new

    v1, e1 = unit(v, e, wa1, wb1, bv1, be1)
    v2, e2 = unit(v1, e1, wa2, wb2, bv2, be2)

    v_out_ref[...] = v2
    e_out_ref[...] = e2


@jax.jit
def cac2_forward(params, v, e):
    """params: (10, dim) rows [w_vv1, w_ev1, w_ve1, b_v1, b_e1,
                               w_vv2, w_ev2, w_ve2, b_v2, b_e2];
       v, e: (B, 1, dim)  ->  (v, e) each (B, 1, dim)."""
    b = v.shape[0]
    dim = v.shape[-1]

    # No casts when already f32; reshapes below are free bitcasts under jit.
    p = params if params.dtype == jnp.float32 else params.astype(jnp.float32)
    v2d = v.reshape(b, dim)
    e2d = e.reshape(b, dim)
    if v2d.dtype != jnp.float32:
        v2d = v2d.astype(jnp.float32)
    if e2d.dtype != jnp.float32:
        e2d = e2d.astype(jnp.float32)

    # Advisory cost so XLA schedules this tiny call tightly.
    cost = pl.CostEstimate(
        flops=16 * b * dim + 4 * dim,
        transcendentals=0,
        bytes_accessed=4 * (10 * dim + 4 * b * dim),
    )

    # Grid-less call: whole problem (<40 KiB) sits in VMEM; full-array
    # BlockSpecs, no pipeline, params/inputs DMA'd exactly once.
    v_out, e_out = pl.pallas_call(
        cac2_kernel,
        out_shape=[
            jax.ShapeDtypeStruct((b, dim), jnp.float32),
            jax.ShapeDtypeStruct((b, dim), jnp.float32),
        ],
        in_specs=[
            pl.BlockSpec(memory_space=pltpu.MemorySpace.VMEM),   # params (10, dim)
            pl.BlockSpec(memory_space=pltpu.MemorySpace.VMEM),   # v (b, dim)
            pl.BlockSpec(memory_space=pltpu.MemorySpace.VMEM),   # e (b, dim)
        ],
        out_specs=[
            pl.BlockSpec(memory_space=pltpu.MemorySpace.VMEM),
            pl.BlockSpec(memory_space=pltpu.MemorySpace.VMEM),
        ],
        cost_estimate=cost,
    )(p, v2d, e2d)

    return v_out.reshape(b, 1, dim), e_out.reshape(b, 1, dim)


# ------------- float64 numpy reference (mirrors the PyTorch code exactly) -------------
def _cac2_ref(params, v, e):
    p = np.asarray(params, dtype=np.float64)
    v = np.asarray(v, dtype=np.float64)
    e = np.asarray(e, dtype=np.float64)
    b, _, dim = v.shape

    def unit(v, e, wvv, wev, wve, bv, be):
        C = np.matmul(e.reshape(b, dim, 1), v)                    # (B, dim, dim)
        v_new = np.matmul(C, wvv) + np.matmul(C, wev) + bv
        e_new = np.matmul(C, wve) + np.matmul(C, wvv) + be
        return v_new.reshape(b, 1, dim), e_new.reshape(b, 1, dim)

    def col(i):
        return p[i].reshape(dim, 1)

    v, e = unit(v, e, col(0), col(1), col(2), col(3), col(4))
    v, e = unit(v, e, col(5), col(6), col(7), col(8), col(9))
    return v, e


if __name__ == "__main__":
    key = jax.random.PRNGKey(0)
    k_v, k_e, k_p = jax.random.split(key, 3)

    # Inputs matching the module's expected shapes: (B, 1, dim)
    v_in = jax.random.normal(k_v, (B, 1, DIM), dtype=jnp.float32)
    e_in = jax.random.normal(k_e, (B, 1, DIM), dtype=jnp.float32)

    # Deterministic parameter init (t.randn equivalent), packed as (10, DIM):
    # rows = [w_vv1, w_ev1, w_ve1, b_v1, b_e1, w_vv2, w_ev2, w_ve2, b_v2, b_e2]
    params = jax.random.normal(k_p, (10, DIM), dtype=jnp.float32)

    v_out, e_out = jax.block_until_ready(cac2_forward(params, v_in, e_in))

    # Compare against an f64 reference of the literal PyTorch forward.
    # Second-unit outputs are O(1e3-1e4); tolerance allows f32 reassociation
    # from the rank-1 factorization while catching real regressions.
    v_ref, e_ref = _cac2_ref(params, v_in, e_in)
    for out, ref in ((v_out, v_ref), (e_out, e_ref)):
        scale = float(np.max(np.abs(ref)))
        np.testing.assert_allclose(np.asarray(out, dtype=np.float64), ref,
                                   rtol=1e-5, atol=1e-5 * scale)

    assert v_out.shape == (B, 1, DIM) and e_out.shape == (B, 1, DIM)
    print("KERNEL_OK")
</pallas_src>

<mosaic_0001>
module attributes {stable_mosaic.version = 11 : i64} {
  func.func @cac2_kernel(%arg0: memref<10x128xf32, #tpu.memory_space<vmem>>, %arg1: memref<16x128xf32, #tpu.memory_space<vmem>>, %arg2: memref<16x128xf32, #tpu.memory_space<vmem>>, %arg3: memref<16x128xf32, #tpu.memory_space<vmem>>, %arg4: memref<16x128xf32, #tpu.memory_space<vmem>>) attributes {dimension_semantics = [], scalar_prefetch = 0 : i64, scratch_operands = 0 : i64, tpu.core_type = #tpu.core_type<tc>} {
    %c0 = arith.constant 0 : index
    %c0_0 = arith.constant 0 : index
    %0 = vector.load %arg0[%c0, %c0_0] : memref<10x128xf32, #tpu.memory_space<vmem>>, vector<10x128xf32>
    %c0_1 = arith.constant 0 : index
    %c0_2 = arith.constant 0 : index
    %1 = vector.load %arg1[%c0_1, %c0_2] : memref<16x128xf32, #tpu.memory_space<vmem>>, vector<16x128xf32>
    %c0_3 = arith.constant 0 : index
    %c0_4 = arith.constant 0 : index
    %2 = vector.load %arg2[%c0_3, %c0_4] : memref<16x128xf32, #tpu.memory_space<vmem>>, vector<16x128xf32>
    %3 = vector.extract_strided_slice %0 {offsets = [0, 0], sizes = [1, 128], strides = [1, 1]} : vector<10x128xf32> to vector<1x128xf32>
    %4 = vector.extract_strided_slice %0 {offsets = [1, 0], sizes = [1, 128], strides = [1, 1]} : vector<10x128xf32> to vector<1x128xf32>
    %5 = arith.addf %3, %4 : vector<1x128xf32>
    %6 = vector.extract_strided_slice %0 {offsets = [0, 0], sizes = [1, 128], strides = [1, 1]} : vector<10x128xf32> to vector<1x128xf32>
    %7 = vector.extract_strided_slice %0 {offsets = [2, 0], sizes = [1, 128], strides = [1, 1]} : vector<10x128xf32> to vector<1x128xf32>
    %8 = arith.addf %6, %7 : vector<1x128xf32>
    %9 = vector.extract_strided_slice %0 {offsets = [3, 0], sizes = [1, 128], strides = [1, 1]} : vector<10x128xf32> to vector<1x128xf32>
    %10 = vector.extract_strided_slice %0 {offsets = [4, 0], sizes = [1, 128], strides = [1, 1]} : vector<10x128xf32> to vector<1x128xf32>
    %11 = vector.extract_strided_slice %0 {offsets = [5, 0], sizes = [1, 128], strides = [1, 1]} : vector<10x128xf32> to vector<1x128xf32>
    %12 = vector.extract_strided_slice %0 {offsets = [6, 0], sizes = [1, 128], strides = [1, 1]} : vector<10x128xf32> to vector<1x128xf32>
    %13 = arith.addf %11, %12 : vector<1x128xf32>
    %14 = vector.extract_strided_slice %0 {offsets = [5, 0], sizes = [1, 128], strides = [1, 1]} : vector<10x128xf32> to vector<1x128xf32>
    %15 = vector.extract_strided_slice %0 {offsets = [7, 0], sizes = [1, 128], strides = [1, 1]} : vector<10x128xf32> to vector<1x128xf32>
    %16 = arith.addf %14, %15 : vector<1x128xf32>
    %17 = vector.extract_strided_slice %0 {offsets = [8, 0], sizes = [1, 128], strides = [1, 1]} : vector<10x128xf32> to vector<1x128xf32>
    %18 = vector.extract_strided_slice %0 {offsets = [9, 0], sizes = [1, 128], strides = [1, 1]} : vector<10x128xf32> to vector<1x128xf32>
    %19 = vector.broadcast %5 : vector<1x128xf32> to vector<16x128xf32>
    %20 = arith.mulf %1, %19 : vector<16x128xf32>
    %cst = arith.constant dense<0.000000e+00> : vector<16xf32>
    %21 = vector.multi_reduction <add>, %20, %cst [1] : vector<16x128xf32> to vector<16xf32>
    %22 = vector.shape_cast %21 : vector<16xf32> to vector<16x1xf32>
    %23 = vector.broadcast %8 : vector<1x128xf32> to vector<16x128xf32>
    %24 = arith.mulf %1, %23 : vector<16x128xf32>
    %cst_5 = arith.constant dense<0.000000e+00> : vector<16xf32>
    %25 = vector.multi_reduction <add>, %24, %cst_5 [1] : vector<16x128xf32> to vector<16xf32>
    %26 = vector.shape_cast %25 : vector<16xf32> to vector<16x1xf32>
    %27 = vector.broadcast %22 : vector<16x1xf32> to vector<16x128xf32>
    %28 = arith.mulf %2, %27 : vector<16x128xf32>
    %29 = vector.broadcast %9 : vector<1x128xf32> to vector<16x128xf32>
    %30 = arith.addf %28, %29 : vector<16x128xf32>
    %31 = vector.broadcast %26 : vector<16x1xf32> to vector<16x128xf32>
    %32 = arith.mulf %2, %31 : vector<16x128xf32>
    %33 = vector.broadcast %10 : vector<1x128xf32> to vector<16x128xf32>
    %34 = arith.addf %32, %33 : vector<16x128xf32>
    %35 = vector.broadcast %13 : vector<1x128xf32> to vector<16x128xf32>
    %36 = arith.mulf %30, %35 : vector<16x128xf32>
    %cst_6 = arith.constant dense<0.000000e+00> : vector<16xf32>
    %37 = vector.multi_reduction <add>, %36, %cst_6 [1] : vector<16x128xf32> to vector<16xf32>
    %38 = vector.shape_cast %37 : vector<16xf32> to vector<16x1xf32>
    %39 = vector.broadcast %16 : vector<1x128xf32> to vector<16x128xf32>
    %40 = arith.mulf %30, %39 : vector<16x128xf32>
    %cst_7 = arith.constant dense<0.000000e+00> : vector<16xf32>
    %41 = vector.multi_reduction <add>, %40, %cst_7 [1] : vector<16x128xf32> to vector<16xf32>
    %42 = vector.shape_cast %41 : vector<16xf32> to vector<16x1xf32>
    %43 = vector.broadcast %38 : vector<16x1xf32> to vector<16x128xf32>
    %44 = arith.mulf %34, %43 : vector<16x128xf32>
    %45 = vector.broadcast %17 : vector<1x128xf32> to vector<16x128xf32>
    %46 = arith.addf %44, %45 : vector<16x128xf32>
    %47 = vector.broadcast %42 : vector<16x1xf32> to vector<16x128xf32>
    %48 = arith.mulf %34, %47 : vector<16x128xf32>
    %49 = vector.broadcast %18 : vector<1x128xf32> to vector<16x128xf32>
    %50 = arith.addf %48, %49 : vector<16x128xf32>
    %c0_8 = arith.constant 0 : index
    %c0_9 = arith.constant 0 : index
    %51 = vector.load %arg3[%c0_8, %c0_9] : memref<16x128xf32, #tpu.memory_space<vmem>>, vector<16x128xf32>
    tpu.vector_store %arg3[%c0_8, %c0_9], %46 {strides = array<i32>} : memref<16x128xf32, #tpu.memory_space<vmem>>, vector<16x128xf32>,
    %c0_10 = arith.constant 0 : index
    %c0_11 = arith.constant 0 : index
    %52 = vector.load %arg4[%c0_10, %c0_11] : memref<16x128xf32, #tpu.memory_space<vmem>>, vector<16x128xf32>
    tpu.vector_store %arg4[%c0_10, %c0_11], %50 {strides = array<i32>} : memref<16x128xf32, #tpu.memory_space<vmem>>, vector<16x128xf32>,
    return
  }
}

</mosaic_0001>

<bundles_post_ra>
// kernel: cac2_forward.1
= control target key start
LH: loop header
LB: loop body
LE: loop exit
PB: predicated region body
PF: predicated region fallthrough
CT: control target
= control target key end

     0   :  { %10 = vsyncpa [#allocation3], 0  ;;  %s421_s0 = inlined_call_operand.hbm [shape: f32[10,128], index: 0, kind: input, shape index: {}]   ;;  %s422_s1 = inlined_call_operand.hbm [shape: f32[16,128], index: 1, kind: input, shape index: {}]   ;;  %s423_s2 = inlined_call_operand.hbm [shape: f32[16,128], index: 2, kind: input, shape index: {}]   ;;  %s424_s3 = inlined_call_operand.hbm [shape: f32[16,128], index: 3, kind: output, shape index: {0}]   ;;  %s425_s4 = inlined_call_operand.hbm [shape: f32[16,128], index: 4, kind: output, shape index: {1}]  }
   0x1   :  { %11 = vsyncpa [#allocation6], 0 }
   0x2   :  { %12 = vsyncpa [#allocation4], 0 }
   0x3   :  { %13 = vsyncpa [#allocation10], 0  ;;  %s307_s15 = smov [#allocation5]   ;;  %s308_s17 = smov [#allocation2]  }
   0x4   :  { %s31_s16 = sshll.u32 %s307_s15, 4  ;;  %s19_s18 = sshll.u32 %s308_s17, 4  ;;  %s32_s16 = int_to_ptr.vmem [resolvable:$true] %s31_s16  ;;  %s339_s18 = int_to_ptr.vmem [resolvable:$true] %s19_s18 }
   0x5   :  { %s189_s21 = scalar_lea.hbm %s422_s1, 256 }
   0x6   :  { %p190_p0 = scmp.ne.s32.totalorder %s422_s1, %s189_s21  ;;  %p193_p1 = scmp.lt.u32.totalorder %s189_s21, %s422_s1 }
   0x8   :  { %p195_p2 = pnand %p193_p1, %p190_p0 }
   0xa   :  { %198 = shalt.err (!%p195_p2)
}
   0xb   :  { %s199_s26 = scalar_lea.vmem %s32_s16, 256  ;;  %p204_p4 = scmp.lt.s32.totalorder %s32_s16, %s32_s16 }
   0xc   :  { %p200_p3 = scmp.ne.s32.totalorder %s32_s16, %s199_s26  ;;  %p205_p5 = scmp.lt.s32.totalorder %s199_s26, %s199_s26 }
   0xe   :  { %p206_p6 = por %p205_p5, %p204_p4 }
  0x10   :  { %p207_p7 = pnand %p206_p6, %p200_p3 }
  0x12   :  { %210 = shalt.err (!%p207_p7)
}
  0x13   :  { %s309_s27 = smov 128   ;;  %s310_s28 = smov 8  }
  0x14   :  { %37 = dma.hbm_to_vmem [thread:$0]  %s422_s1, 256, %s32_s16, [#allocation6], %s309_s27, %s309_s27, %s310_s28  }
  0x15   :  { %s211_s7 = scalar_lea.hbm %s421_s0, 256 }
  0x16   :  { %p212_p8 = scmp.ne.s32.totalorder %s421_s0, %s211_s7  ;;  %p215_p9 = scmp.lt.u32.totalorder %s211_s7, %s421_s0 }
  0x18   :  { %p217_p10 = pnand %p215_p9, %p212_p8 }
  0x1a   :  { %220 = shalt.err (!%p217_p10)
}
  0x1b   :  { %s221_s12 = scalar_lea.vmem %s339_s18, 256  ;;  %p226_p12 = scmp.lt.s32.totalorder %s339_s18, %s339_s18 }
  0x1c   :  { %p222_p11 = scmp.ne.s32.totalorder %s339_s18, %s221_s12  ;;  %p227_p13 = scmp.lt.s32.totalorder %s221_s12, %s221_s12 }
  0x1e   :  { %p228_p0 = por %p227_p13, %p226_p12 }
  0x20   :  { %p229_p1 = pnand %p228_p0, %p222_p11 }
  0x22   :  { %232 = shalt.err (!%p229_p1)
}
  0x23   :  { %25 = dma.hbm_to_vmem [thread:$0]  %s421_s0, 256, %s339_s18, [#allocation3], %s309_s27, %s309_s27, %s310_s28  }
  0x24   :  { %s311_s14 = smov [#allocation7]   ;;  %s233_s19 = scalar_lea.hbm %s423_s2, 256 }
  0x25   :  { %s43_s15 = sshll.u32 %s311_s14, 4  ;;  %p234_p2 = scmp.ne.s32.totalorder %s423_s2, %s233_s19  ;;  %s44_s15 = int_to_ptr.vmem [resolvable:$true] %s43_s15 }
  0x26   :  { %p237_p3 = scmp.lt.u32.totalorder %s233_s19, %s423_s2 }
  0x28   :  { %p239_p4 = pnand %p237_p3, %p234_p2 }
  0x2a   :  { %242 = shalt.err (!%p239_p4)
}
  0x2b   :  { %s243_s24 = scalar_lea.vmem %s44_s15, 256  ;;  %p248_p6 = scmp.lt.s32.totalorder %s44_s15, %s44_s15 }
  0x2c   :  { %p244_p5 = scmp.ne.s32.totalorder %s44_s15, %s243_s24  ;;  %p249_p7 = scmp.lt.s32.totalorder %s243_s24, %s243_s24 }
  0x2e   :  { %p250_p8 = por %p249_p7, %p248_p6 }
  0x30   :  { %p251_p9 = pnand %p250_p8, %p244_p5 }
  0x32   :  { %254 = shalt.err (!%p251_p9)
}
  0x33   :  { %49 = dma.hbm_to_vmem [thread:$0]  %s423_s2, 256, %s44_s15, [#allocation6], %s309_s27, %s309_s27, %s310_s28  }
  0x34   :  { %299 = dma.done.wait [#allocation3], 256  }
  0x35   :  { %300 = vsyncadd [#allocation3], 4294967040 }
  0x36   :  { %301 = dma.done.wait [#allocation6], 512  }
  0x37   :  { %302 = vsyncadd [#allocation6], 4294966784  ;;  %v72_v0 = vlaneseq  ;;  %v59_v2 = vld [vmem:[#allocation2] sm:$0xff]  ;;  %v61_v6 = vld [vmem:[#allocation5] sm:$0xff]  ;;  %s312_s2 = smov [#allocation8]   ;;  %s313_s26 = smov [#allocation9]  }
  0x38   :  { %v66_v3 = vrot.slane %v59_v2, 1  ;;  %v62_v8 = vld [vmem:[#allocation5 + $0x8] sm:$0xff]  ;;  %v69_v11 = vrot.slane %v59_v2, 2  ;;  %v63_v18 = vld [vmem:[#allocation7] sm:$0xff]  ;;  %v64_v24 = vld [vmem:[#allocation7 + $0x8] sm:$0xff]  ;;  %s153_s25 = sshll.u32 %s312_s2, 4  ;;  %s154_s25 = int_to_ptr.vmem [resolvable:$true] %s153_s25 }
  0x39   :  { %v73_v1 = vshrl.u32 %v72_v0, 7  ;;  %v60_v41 = vld [vmem:[#allocation2 + $0x8] sm:$0x3]  ;;  %s165_s29 = sshll.u32 %s313_s26, 4  ;;  %s255_s30 = scalar_lea.vmem %s154_s25, 256  ;;  %s166_s29 = int_to_ptr.vmem [resolvable:$true] %s165_s29 }
  0x3a   :  { %v68_v5 = vadd.f32 %v66_v3, %v59_v2  ;;  %v71_v12 = vadd.f32 %v69_v11, %v59_v2  ;;  %p256_p10 = scmp.ne.s32.totalorder %s154_s25, %s255_s30  ;;  %p260_p11 = scmp.lt.s32.totalorder %s154_s25, %s154_s25 }
  0x3b   :  { %v74_v4 = vsub.s32 0, %v73_v1  ;;  %v96_v16 = vsub.s32 3, %v73_v1  ;;  %v110_v17 = vsub.s32 5, %v73_v1  ;;  %v104_v33 = vsub.s32 4, %v73_v1  ;;  %p261_p12 = scmp.lt.s32.totalorder %s255_s30, %s255_s30 }
  0x3c   :  { %v140_v43 = vsub.s32 1, %v73_v1 }
  0x3d   :  { %v75_v7 = vrot.slane %v68_v5, %v74_v4  ;;  %v85_v13 = vrot.slane %v71_v12, %v74_v4  ;;  %v97_v19 = vrot.slane %v59_v2, %v96_v16  ;;  %v111_v22 = vrot.slane %v68_v5, %v110_v17  ;;  %p262_p13 = por %p261_p12, %p260_p11 }
  0x3e   :  { %v121_v23 = vrot.slane %v71_v12, %v110_v17  ;;  %v105_v34 = vrot.slane %v59_v2, %v104_v33  ;;  %v133_v42 = vrot.slane %v60_v41, %v74_v4  ;;  %v141_v47 = vrot.slane %v60_v41, %v140_v43 }
  0x3f   :  { %v76_v9 = vmul.f32 %v75_v7, %v61_v6  ;;  %v77_v10 = vmul.f32 %v75_v7, %v62_v8  ;;  %v86_v14 = vmul.f32 %v85_v13, %v61_v6  ;;  %v87_v15 = vmul.f32 %v85_v13, %v62_v8  ;;  %p263_p0 = pnand %p262_p13, %p256_p10 }
  0x41   :  { %78 = vadd.xlane.f32.xlu0 %v76_v9  ;;  %88 = vadd.xlane.f32.xlu1 %v86_v14 }
  0x45   :  { %80 = vadd.xlane.f32.xlu0 %v77_v10  ;;  %90 = vadd.xlane.f32.xlu1 %v87_v15 }
  0xce   :  { %v79_v20 = vpop.xlane.xlu0 %78  ;;  %v89_v35 = vpop.xlane.xlu1 %88 }
  0xcf   :  { %v92_v21 = vmul.f32 %v79_v20, %v63_v18  ;;  %v100_v36 = vmul.f32 %v89_v35, %v63_v18 }
  0xd1   :  { %v98_v25 = vadd.f32 %v97_v19, %v92_v21  ;;  %v106_v37 = vadd.f32 %v105_v34, %v100_v36 }
  0xd2   :  { %v81_v26 = vpop.xlane.xlu0 %80  ;;  %v91_v38 = vpop.xlane.xlu1 %90 }
  0xd3   :  { %v93_v27 = vmul.f32 %v81_v26, %v64_v24  ;;  %v112_v28 = vmul.f32 %v111_v22, %v98_v25  ;;  %v122_v29 = vmul.f32 %v121_v23, %v98_v25  ;;  %v101_v39 = vmul.f32 %v91_v38, %v64_v24 }
  0xd5   :  { %v99_v30 = vadd.f32 %v97_v19, %v93_v27  ;;  %114 = vadd.xlane.f32.xlu0 %v112_v28  ;;  %v107_v40 = vadd.f32 %v105_v34, %v101_v39 }
  0xd7   :  { %v113_v31 = vmul.f32 %v111_v22, %v99_v30  ;;  %v123_v32 = vmul.f32 %v121_v23, %v99_v30 }
  0xd9   :  { %124 = vadd.xlane.f32.xlu0 %v122_v29  ;;  %116 = vadd.xlane.f32.xlu1 %v113_v31 }
  0xdd   :  { %126 = vadd.xlane.f32.xlu1 %v123_v32 }
 0x162   :  { %v115_v44 = vpop.xlane.xlu0 %114 }
 0x163   :  { %v128_v45 = vmul.f32 %v115_v44, %v106_v37 }
 0x165   :  { %v134_v46 = vadd.f32 %v133_v42, %v128_v45 }
 0x166   :  { %v117_v48 = vpop.xlane.xlu1 %116  ;;  %v125_v49 = vpop.xlane.xlu0 %124 }
 0x167   :  { %144 = vst [vmem:[#allocation8] sm:$0xff] %v134_v46  ;;  %v129_v50 = vmul.f32 %v117_v48, %v107_v40  ;;  %v136_v51 = vmul.f32 %v125_v49, %v106_v37 }
 0x169   :  { %v135_v52 = vadd.f32 %v133_v42, %v129_v50  ;;  %v142_v53 = vadd.f32 %v141_v47, %v136_v51 }
 0x16a   :  { %v127_v54 = vpop.xlane.xlu1 %126 }
 0x16b   :  { %145 = vst [vmem:[#allocation8 + $0x8] sm:$0xff] %v135_v52  ;;  %146 = vst [vmem:[#allocation9] sm:$0xff] %v142_v53  ;;  %v137_v55 = vmul.f32 %v127_v54, %v107_v40 }
 0x16c   :  { %266 = shalt.err (!%p263_p0)
}
 0x16d   :  { %s267_s7 = scalar_lea.hbm %s424_s3, 256 }
 0x16e   :  { %p268_p1 = scmp.ne.s32.totalorder %s424_s3, %s267_s7  ;;  %p271_p2 = scmp.lt.u32.totalorder %s267_s7, %s424_s3 }
 0x170   :  { %p273_p3 = pnand %p271_p2, %p268_p1 }
 0x172   :  { %276 = shalt.err (!%p273_p3)
}
 0x173   :  { %159 = dma.vmem_to_hbm [thread:$0]  %s154_s25, 256, %s424_s3, [#allocation4], %s309_s27, %s309_s27, %s310_s28   ;;  %v143_v56 = vadd.f32 %v141_v47, %v137_v55 }
 0x174   :  { %s277_s13 = scalar_lea.vmem %s166_s29, 256  ;;  %p282_p5 = scmp.lt.s32.totalorder %s166_s29, %s166_s29 }
 0x175   :  { %147 = vst [vmem:[#allocation9 + $0x8] sm:$0xff] %v143_v56  ;;  %p278_p4 = scmp.ne.s32.totalorder %s166_s29, %s277_s13  ;;  %p283_p6 = scmp.lt.s32.totalorder %s277_s13, %s277_s13 }
 0x177   :  { %p284_p7 = por %p283_p6, %p282_p5 }
 0x179   :  { %p285_p8 = pnand %p284_p7, %p278_p4 }
 0x17b   :  { %288 = shalt.err (!%p285_p8)
}
 0x17c   :  { %s289_s16 = scalar_lea.hbm %s425_s4, 256 }
 0x17d   :  { %p290_p9 = scmp.ne.s32.totalorder %s425_s4, %s289_s16  ;;  %p293_p10 = scmp.lt.u32.totalorder %s289_s16, %s425_s4 }
 0x17f   :  { %p295_p11 = pnand %p293_p10, %p290_p9 }
 0x181   :  { %298 = shalt.err (!%p295_p11)
}
 0x182   :  { %171 = dma.vmem_to_hbm [thread:$0]  %s166_s29, 256, %s425_s4, [#allocation10], %s309_s27, %s309_s27, %s310_s28  }
 0x183   :  { %303 = dma.done.wait [#allocation4], 256  }
 0x184   :  { %304 = vsyncadd [#allocation4], 4294967040 }
 0x185   :  { %305 = dma.done.wait [#allocation10], 256  }
 0x186   :  { %306 = vsyncadd [#allocation10], 4294967040 }
 0x187   :  { %178 = vsyncpa [#allocation3], 1 }
 0x188   :  { %179 = vsyncpa [#allocation6], 1 }
 0x189   :  { %180 = vsyncpa [#allocation4], 1 }
 0x18a   :  { %181 = vsyncpa [#allocation10], 1 }

</bundles_post_ra>
